<compile_context>
chip_gen: v5e
topology: v5e:2x2
jax: 0.10.0
libtpu: 0.0.40
codegen_flags: <defaults>
</compile_context>

<pallas_src>
from functools import partial

import jax
import jax.numpy as jnp
from jax.experimental import pallas as pl
from jax.experimental.pallas import tpu as pltpu


# --------------------------------------------------------------------------- #
# Kernel: one SAGEConv layer, grid = (N_pad//TM row tiles, N_pad//TK k tiles)  #
# --------------------------------------------------------------------------- #
def sage_layer_kernel(adj_ref,      # (TM, TK)      bf16  weighted adjacency tile
                      x_nbr_ref,    # (TK, F_pad)   bf16  neighbor feature tile
                      x_self_ref,   # (TM, F_pad)   bf16  self feature tile
                      dinv_ref,     # (TM, 1)       f32   1 / weighted degree
                      w_self_ref,   # (F_pad, C_pad) bf16 (VMEM-resident)
                      w_nbr_ref,    # (F_pad, C_pad) bf16 (VMEM-resident)
                      b_ref,        # (1, C_pad)    f32   (VMEM-resident)
                      o_ref,        # (TM, C_pad)   out dtype
                      acc_ref,      # (TM, C_pad)   f32 scratch accumulator
                      *, relu):
    k = pl.program_id(1)

    @pl.when(k == 0)
    def _():
        acc_ref[...] = jnp.zeros_like(acc_ref)

    # Neighbor transform for this K tile, then aggregate with the adjacency
    # tile: acc += A[i,k] @ (X[k] @ W_neigh). Both dots are bf16 MXU-native
    # with f32 accumulation.
    h_k = jnp.dot(x_nbr_ref[...], w_nbr_ref[...],
                  preferred_element_type=jnp.float32).astype(jnp.bfloat16)
    acc_ref[...] += jnp.dot(adj_ref[...], h_k,
                            preferred_element_type=jnp.float32)

    @pl.when(k == pl.num_programs(1) - 1)
    def _():
        # Mean aggregation (fold D^-1 here instead of a separate N^2 HBM pass),
        # root/self transform, bias, optional ReLU.
        self_t = jnp.dot(x_self_ref[...], w_self_ref[...],
                         preferred_element_type=jnp.float32)
        out = acc_ref[...] * dinv_ref[...] + self_t + b_ref[...]
        if relu:
            out = jnp.maximum(out, 0.0)
        o_ref[...] = out.astype(o_ref.dtype)


# --------------------------------------------------------------------------- #
# Wrapper helpers                                                             #
# --------------------------------------------------------------------------- #
def _round_up(v, m):
    return ((v + m - 1) // m) * m


def _pick_tile(n, pref):
    """Largest multiple of 128 that is <= pref and divides n (n % 128 == 0)."""
    t = min(pref, n)
    while n % t:
        t -= 128
    return max(t, 128)


def _pad2(a, rows, cols, dtype):
    out = jnp.zeros((rows, cols), dtype)
    return out.at[: a.shape[0], : a.shape[1]].set(a.astype(dtype))


def sage_conv_pallas(adj, dinv, x, w_self, w_nbr, b, *, relu, out_dtype):
    """One SAGEConv layer. adj:(Np,Np) bf16, x:(Np,Fp) bf16, dinv:(Np,1) f32,
    w_*:(Fp,Cp) bf16, b:(1,Cp) f32 -> (Np,Cp) out_dtype."""
    n_pad = adj.shape[0]
    f_pad = x.shape[1]
    c_pad = w_self.shape[1]

    # Tile sizes: modest bf16 tiles (<=256x1024 = 512 KiB/buffer) that fit the
    # scoped VMEM of v5e/v6e/v7x with double buffering; 128-aligned for MXU.
    tm = _pick_tile(n_pad, 256)
    tk = _pick_tile(n_pad, 1024)
    grid = (n_pad // tm, n_pad // tk)

    flops = 2 * n_pad * n_pad * c_pad + 2 * 2 * n_pad * f_pad * c_pad
    bytes_accessed = (adj.size * 2 + 2 * x.size * 2 + dinv.size * 4
                      + (w_self.size + w_nbr.size) * 2 + b.size * 4
                      + n_pad * c_pad * jnp.dtype(out_dtype).itemsize)

    return pl.pallas_call(
        partial(sage_layer_kernel, relu=relu),
        out_shape=jax.ShapeDtypeStruct((n_pad, c_pad), out_dtype),
        grid_spec=pltpu.PrefetchScalarGridSpec(
            num_scalar_prefetch=0,
            grid=grid,
            in_specs=[
                pl.BlockSpec((tm, tk), lambda i, k: (i, k)),        # adjacency tile
                pl.BlockSpec((tk, f_pad), lambda i, k: (k, 0)),     # neighbor feats
                pl.BlockSpec((tm, f_pad), lambda i, k: (i, 0)),     # self feats
                pl.BlockSpec((tm, 1), lambda i, k: (i, 0)),         # 1/deg (rows)
                pl.BlockSpec((f_pad, c_pad), lambda i, k: (0, 0)),  # W_self
                pl.BlockSpec((f_pad, c_pad), lambda i, k: (0, 0)),  # W_neigh
                pl.BlockSpec((1, c_pad), lambda i, k: (0, 0)),      # bias
            ],
            out_specs=pl.BlockSpec((tm, c_pad), lambda i, k: (i, 0)),
            scratch_shapes=[pltpu.VMEM((tm, c_pad), jnp.float32)],
        ),
        compiler_params=pltpu.CompilerParams(
            dimension_semantics=("parallel", "arbitrary")),
        cost_estimate=pl.CostEstimate(
            flops=int(flops), transcendentals=0,
            bytes_accessed=int(bytes_accessed)),
    )(adj, x, x, dinv, w_self, w_nbr, b)


def graphsage_forward(x, edge_index, params, edge_weight=None):
    """Equivalent of GraphSAGE.forward(x, edge_index, edge_weight) in eval mode."""
    n, f_in = x.shape
    hid = params["w1_self"].shape[1]
    c_out = params["w2_self"].shape[1]
    if edge_weight is None:
        edge_weight = jnp.ones((edge_index.shape[1],), dtype=jnp.float32)

    # Dense weighted adjacency (rows = target, cols = source; PyG convention).
    adj = jnp.zeros((n, n), jnp.float32).at[edge_index[1], edge_index[0]].add(
        edge_weight.astype(jnp.float32))
    deg = adj.sum(axis=1)
    dinv = jnp.where(deg > 0, 1.0 / deg, 0.0)  # weighted-mean aggregation

    # Pad to TPU-friendly shapes (lane-dense 128 feature dims, 128-aligned N).
    n_pad = _round_up(n, 128)
    f_pad = _round_up(f_in, 128)
    h_pad = _round_up(hid, 128)
    c_pad = _round_up(c_out, 128)

    adj_p = _pad2(adj, n_pad, n_pad, jnp.bfloat16)
    x_p = _pad2(x, n_pad, f_pad, jnp.bfloat16)
    dinv_p = jnp.zeros((n_pad, 1), jnp.float32).at[:n, 0].set(dinv)

    w1s = _pad2(params["w1_self"], f_pad, h_pad, jnp.bfloat16)
    w1n = _pad2(params["w1_nbr"], f_pad, h_pad, jnp.bfloat16)
    b1 = jnp.zeros((1, h_pad), jnp.float32).at[0, :hid].set(params["b1"])
    w2s = _pad2(params["w2_self"], h_pad, c_pad, jnp.bfloat16)
    w2n = _pad2(params["w2_nbr"], h_pad, c_pad, jnp.bfloat16)
    b2 = jnp.zeros((1, c_pad), jnp.float32).at[0, :c_out].set(params["b2"])

    # dropout(x) is the identity at inference.
    h1 = sage_conv_pallas(adj_p, dinv_p, x_p, w1s, w1n, b1,
                          relu=True, out_dtype=jnp.bfloat16)
    out = sage_conv_pallas(adj_p, dinv_p, h1, w2s, w2n, b2,
                           relu=False, out_dtype=jnp.float32)
    return out[:n, :c_out]


# --------------------------------------------------------------------------- #
# Demo / self-check                                                           #
# --------------------------------------------------------------------------- #
if __name__ == "__main__":
    key = jax.random.PRNGKey(0)
    ks = jax.random.split(key, 8)

    N, F_IN, HID, C_OUT, E = 8, 32, 64, 4, 16  # nodes, in, hidden, out, edges

    x = jax.random.normal(ks[0], (N, F_IN), dtype=jnp.float32)
    src = jax.random.randint(ks[1], (E,), 0, N)
    dst = jax.random.randint(ks[2], (E,), 0, N)
    edge_index = jnp.stack([src, dst], axis=0)           # [2, E]
    edge_weight = jnp.ones((E,), jnp.float32)            # as in __init__

    params = {
        "w1_self": jax.random.normal(ks[3], (F_IN, HID)) / jnp.sqrt(F_IN),
        "w1_nbr": jax.random.normal(ks[4], (F_IN, HID)) / jnp.sqrt(F_IN),
        "b1": jnp.zeros((HID,), jnp.float32),
        "w2_self": jax.random.normal(ks[5], (HID, C_OUT)) / jnp.sqrt(HID),
        "w2_nbr": jax.random.normal(ks[6], (HID, C_OUT)) / jnp.sqrt(HID),
        "b2": jnp.zeros((C_OUT,), jnp.float32),
    }

    out = graphsage_forward(x, edge_index, params, edge_weight)
    jax.block_until_ready(out)

    # ---- pure-JAX reference with matching bf16 quantization points ---------
    adj = jnp.zeros((N, N), jnp.float32).at[edge_index[1], edge_index[0]].add(edge_weight)
    deg = adj.sum(axis=1)
    dinv = jnp.where(deg > 0, 1.0 / deg, 0.0)

    def q(a):  # bf16 quantize (values the kernel actually consumes)
        return a.astype(jnp.bfloat16).astype(jnp.float32)

    adjq, xq = q(adj), q(x)

    def ref_layer(xin, ws, wn, b, relu):
        h_n = q(xin @ q(wn))                       # per-tile bf16 recast in kernel
        agg = (adjq @ h_n) * dinv[:, None]
        o = agg + xin @ q(ws) + b[None, :]
        return jnp.maximum(o, 0.0) if relu else o

    h1_ref = q(ref_layer(xq, params["w1_self"], params["w1_nbr"], params["b1"], True))
    ref = ref_layer(h1_ref, params["w2_self"], params["w2_nbr"], params["b2"], False)

    assert out.shape == (N, C_OUT), f"bad shape {out.shape}"
    assert jnp.allclose(out, ref, atol=2e-2, rtol=2e-2), "mismatch vs reference"

    print("KERNEL_OK")
</pallas_src>

<mosaic_0001>
module attributes {stable_mosaic.version = 11 : i64} {
  func.func @sage_layer_kernel(%arg0: i32, %arg1: i32, %arg2: memref<128x128xbf16, #tpu.memory_space<vmem>>, %arg3: memref<128x128xbf16, #tpu.memory_space<vmem>>, %arg4: memref<128x128xbf16, #tpu.memory_space<vmem>>, %arg5: memref<128x1xf32, #tpu.memory_space<vmem>>, %arg6: memref<128x128xbf16, #tpu.memory_space<vmem>>, %arg7: memref<128x128xbf16, #tpu.memory_space<vmem>>, %arg8: memref<1x128xf32, #tpu.memory_space<vmem>>, %arg9: memref<128x128xbf16, #tpu.memory_space<vmem>>, %arg10: memref<128x128xf32, #tpu.memory_space<vmem>>) attributes {dimension_semantics = [#tpu.dimension_semantics<parallel>, #tpu.dimension_semantics<arbitrary>], iteration_bounds = array<i64: 1, 1>, scalar_prefetch = 0 : i64, scratch_operands = 1 : i64, tpu.core_type = #tpu.core_type<tc>, window_params = [{transform_indices = @transform_0, window_bounds = array<i64: 128, 128>}, {transform_indices = @transform_1, window_bounds = array<i64: 128, 128>}, {transform_indices = @transform_2, window_bounds = array<i64: 128, 128>}, {transform_indices = @transform_3, window_bounds = array<i64: 128, 1>}, {pipeline_mode = #tpu.pipeline_mode<synchronous>, transform_indices = @transform_4, window_bounds = array<i64: 128, 128>}, {pipeline_mode = #tpu.pipeline_mode<synchronous>, transform_indices = @transform_5, window_bounds = array<i64: 128, 128>}, {pipeline_mode = #tpu.pipeline_mode<synchronous>, transform_indices = @transform_6, window_bounds = array<i64: 1, 128>}, {transform_indices = @transform_7, window_bounds = array<i64: 128, 128>}]} {
    %c0_i32 = arith.constant 0 : i32
    %0 = arith.cmpi eq, %arg1, %c0_i32 : i32
    %1 = arith.extui %0 : i1 to i32
    %c0_i32_0 = arith.constant 0 : i32
    %2 = arith.cmpi ne, %1, %c0_i32_0 : i32
    scf.if %2 {
      %cst_13 = arith.constant 0.000000e+00 : f32
      %15 = vector.broadcast %cst_13 : f32 to vector<128x128xf32>
      %c0_14 = arith.constant 0 : index
      %c0_15 = arith.constant 0 : index
      %16 = vector.load %arg10[%c0_14, %c0_15] : memref<128x128xf32, #tpu.memory_space<vmem>>, vector<128x128xf32>
      tpu.vector_store %arg10[%c0_14, %c0_15], %15 {strides = array<i32>} : memref<128x128xf32, #tpu.memory_space<vmem>>, vector<128x128xf32>,
    } else {
    }
    %c0 = arith.constant 0 : index
    %c0_1 = arith.constant 0 : index
    %3 = vector.load %arg3[%c0, %c0_1] : memref<128x128xbf16, #tpu.memory_space<vmem>>, vector<128x128xbf16>
    %c0_2 = arith.constant 0 : index
    %c0_3 = arith.constant 0 : index
    %4 = vector.load %arg7[%c0_2, %c0_3] : memref<128x128xbf16, #tpu.memory_space<vmem>>, vector<128x128xbf16>
    %cst = arith.constant dense<0.000000e+00> : vector<128x128xf32>
    %5 = tpu.matmul %3, %4, %cst {dimension_numbers = #tpu.dot_dimension_numbers<[1], [0], [0], [1], [0, 0, 1, 1], [], []>} : vector<128x128xbf16>, vector<128x128xbf16>, vector<128x128xf32> -> vector<128x128xf32>
    %6 = arith.truncf %5 : vector<128x128xf32> to vector<128x128xbf16>
    %c0_4 = arith.constant 0 : index
    %c0_5 = arith.constant 0 : index
    %7 = vector.load %arg10[%c0_4, %c0_5] : memref<128x128xf32, #tpu.memory_space<vmem>>, vector<128x128xf32>
    %c0_6 = arith.constant 0 : index
    %c0_7 = arith.constant 0 : index
    %8 = vector.load %arg2[%c0_6, %c0_7] : memref<128x128xbf16, #tpu.memory_space<vmem>>, vector<128x128xbf16>
    %cst_8 = arith.constant dense<0.000000e+00> : vector<128x128xf32>
    %9 = tpu.matmul %8, %6, %cst_8 {dimension_numbers = #tpu.dot_dimension_numbers<[1], [0], [0], [1], [0, 0, 1, 1], [], []>} : vector<128x128xbf16>, vector<128x128xbf16>, vector<128x128xf32> -> vector<128x128xf32>
    %10 = arith.addf %7, %9 : vector<128x128xf32>
    %c0_9 = arith.constant 0 : index
    %c0_10 = arith.constant 0 : index
    %11 = vector.load %arg10[%c0_9, %c0_10] : memref<128x128xf32, #tpu.memory_space<vmem>>, vector<128x128xf32>
    tpu.vector_store %arg10[%c0_9, %c0_10], %10 {strides = array<i32>} : memref<128x128xf32, #tpu.memory_space<vmem>>, vector<128x128xf32>,
    %c0_i32_11 = arith.constant 0 : i32
    %12 = arith.cmpi eq, %arg1, %c0_i32_11 : i32
    %13 = arith.extui %12 : i1 to i32
    %c0_i32_12 = arith.constant 0 : i32
    %14 = arith.cmpi ne, %13, %c0_i32_12 : i32
    scf.if %14 {
      %c0_13 = arith.constant 0 : index
      %c0_14 = arith.constant 0 : index
      %15 = vector.load %arg4[%c0_13, %c0_14] : memref<128x128xbf16, #tpu.memory_space<vmem>>, vector<128x128xbf16>
      %c0_15 = arith.constant 0 : index
      %c0_16 = arith.constant 0 : index
      %16 = vector.load %arg6[%c0_15, %c0_16] : memref<128x128xbf16, #tpu.memory_space<vmem>>, vector<128x128xbf16>
      %cst_17 = arith.constant dense<0.000000e+00> : vector<128x128xf32>
      %17 = tpu.matmul %15, %16, %cst_17 {dimension_numbers = #tpu.dot_dimension_numbers<[1], [0], [0], [1], [0, 0, 1, 1], [], []>} : vector<128x128xbf16>, vector<128x128xbf16>, vector<128x128xf32> -> vector<128x128xf32>
      %c0_18 = arith.constant 0 : index
      %c0_19 = arith.constant 0 : index
      %18 = vector.load %arg10[%c0_18, %c0_19] : memref<128x128xf32, #tpu.memory_space<vmem>>, vector<128x128xf32>
      %c0_20 = arith.constant 0 : index
      %c0_21 = arith.constant 0 : index
      %19 = vector.load %arg5[%c0_20, %c0_21] : memref<128x1xf32, #tpu.memory_space<vmem>>, vector<128x1xf32>
      %20 = vector.broadcast %19 : vector<128x1xf32> to vector<128x128xf32>
      %21 = arith.mulf %18, %20 : vector<128x128xf32>
      %22 = arith.addf %21, %17 : vector<128x128xf32>
      %c0_22 = arith.constant 0 : index
      %c0_23 = arith.constant 0 : index
      %23 = vector.load %arg8[%c0_22, %c0_23] : memref<1x128xf32, #tpu.memory_space<vmem>>, vector<1x128xf32>
      %24 = vector.broadcast %23 : vector<1x128xf32> to vector<128x128xf32>
      %25 = arith.addf %22, %24 : vector<128x128xf32>
      %cst_24 = arith.constant 0.000000e+00 : f32
      %26 = vector.broadcast %cst_24 : f32 to vector<128x128xf32>
      %27 = arith.maximumf %25, %26 : vector<128x128xf32>
      %28 = arith.truncf %27 : vector<128x128xf32> to vector<128x128xbf16>
      %c0_25 = arith.constant 0 : index
      %c0_26 = arith.constant 0 : index
      %29 = vector.load %arg9[%c0_25, %c0_26] : memref<128x128xbf16, #tpu.memory_space<vmem>>, vector<128x128xbf16>
      tpu.vector_store %arg9[%c0_25, %c0_26], %28 {strides = array<i32>} : memref<128x128xbf16, #tpu.memory_space<vmem>>, vector<128x128xbf16>,
    } else {
    }
    return
  }
  func.func @transform_0(%arg0: i32, %arg1: i32) -> (i32, i32) {
    %c0_i32 = arith.constant 0 : i32
    return %arg0, %arg1 : i32, i32
  }
  func.func @transform_1(%arg0: i32, %arg1: i32) -> (i32, i32) {
    %c0_i32 = arith.constant 0 : i32
    %c0_i32_0 = arith.constant 0 : i32
    return %arg1, %c0_i32 : i32, i32
  }
  func.func @transform_2(%arg0: i32, %arg1: i32) -> (i32, i32) {
    %c0_i32 = arith.constant 0 : i32
    %c0_i32_0 = arith.constant 0 : i32
    return %arg0, %c0_i32 : i32, i32
  }
  func.func @transform_3(%arg0: i32, %arg1: i32) -> (i32, i32) {
    %c0_i32 = arith.constant 0 : i32
    %c0_i32_0 = arith.constant 0 : i32
    return %arg0, %c0_i32 : i32, i32
  }
  func.func @transform_4(%arg0: i32, %arg1: i32) -> (i32, i32) {
    %c0_i32 = arith.constant 0 : i32
    %c0_i32_0 = arith.constant 0 : i32
    %c0_i32_1 = arith.constant 0 : i32
    return %c0_i32, %c0_i32_0 : i32, i32
  }
  func.func @transform_5(%arg0: i32, %arg1: i32) -> (i32, i32) {
    %c0_i32 = arith.constant 0 : i32
    %c0_i32_0 = arith.constant 0 : i32
    %c0_i32_1 = arith.constant 0 : i32
    return %c0_i32, %c0_i32_0 : i32, i32
  }
  func.func @transform_6(%arg0: i32, %arg1: i32) -> (i32, i32) {
    %c0_i32 = arith.constant 0 : i32
    %c0_i32_0 = arith.constant 0 : i32
    %c0_i32_1 = arith.constant 0 : i32
    return %c0_i32, %c0_i32_0 : i32, i32
  }
  func.func @transform_7(%arg0: i32, %arg1: i32) -> (i32, i32) {
    %c0_i32 = arith.constant 0 : i32
    %c0_i32_0 = arith.constant 0 : i32
    return %arg0, %c0_i32 : i32, i32
  }
}

</mosaic_0001>

<bundles_post_ra>
// kernel: tpu_custom_call.1
= control target key start
LH: loop header
LB: loop body
LE: loop exit
PB: predicated region body
PF: predicated region fallthrough
CT: control target
= control target key end

     0   :  { %12 = vsyncpa [#allocation4], 0  ;;  %s1470_s0 = inlined_call_operand.vmem [shape: bf16[128,128], index: 0, kind: input, shape index: {}]   ;;  %s1471_s1 = inlined_call_operand.vmem [shape: bf16[128,128], index: 1, kind: input, shape index: {}]   ;;  %s1472_s2 = inlined_call_operand.hbm [shape: bf16[128,128], index: 2, kind: input, shape index: {}]   ;;  %s1473_s3 = inlined_call_operand.vmem [shape: f32[128,1], index: 3, kind: input, shape index: {}]   ;;  %s1474_s4 = inlined_call_operand.hbm [shape: bf16[128,128], index: 4, kind: input, shape index: {}]   ;;  %s1475_s5 = inlined_call_operand.hbm [shape: bf16[128,128], index: 5, kind: input, shape index: {}]   ;;  %s1476_s6 = inlined_call_operand.vmem [shape: f32[1,128], index: 6, kind: input, shape index: {}]   ;;  %s1477_s7 = inlined_call_operand.hbm [shape: bf16[128,128], index: 7, kind: output, shape index: {}]  }
   0x1   :  { %13 = vsyncpa [#allocation7], 0 }
   0x2   :  { %14 = vsyncpa [#allocation5], 0  ;;  %s38_s26 = sshll.u32 %s1474_s4, 4  ;;  %s1236_s27 = smov [#allocation6]   ;;  %s39_s26 = int_to_ptr.hbm [resolvable:$true] %s38_s26 }
   0x3   :  { %s40_s28 = sshll.u32 %s1236_s27, 4  ;;  %s23_s8 = sshll.u32 %s1472_s2, 4  ;;  %s41_s28 = int_to_ptr.vmem [resolvable:$true] %s40_s28  ;;  %s24_s8 = int_to_ptr.hbm [resolvable:$true] %s23_s8 }
   0x4   :  { %s1237_s9 = smov 64   ;;  %s1238_s10 = smov 4  }
   0x5   :  { %46 = dma.hbm_to_vmem [thread:$0]  %s39_s26, 1024, %s41_s28, [#allocation7], %s1237_s9, %s1237_s9, %s1238_s10  }
   0x6   :  { %s1239_s11 = smov [#allocation3]   ;;  %s51_s4 = sshll.u32 %s1475_s5, 4  ;;  %s52_s4 = int_to_ptr.hbm [resolvable:$true] %s51_s4 }
   0x7   :  { %s25_s12 = sshll.u32 %s1239_s11, 4  ;;  %s1240_s2 = smov [#allocation8]   ;;  %s26_s12 = int_to_ptr.vmem [resolvable:$true] %s25_s12 }
   0x8   :  { %31 = dma.hbm_to_vmem [thread:$0]  %s24_s8, 1024, %s26_s12, [#allocation4], %s1237_s9, %s1237_s9, %s1238_s10  }
   0x9   :  { %s53_s15 = sshll.u32 %s1240_s2, 4  ;;  %s54_s15 = int_to_ptr.vmem [resolvable:$true] %s53_s15 }
   0xa   :  { %59 = dma.hbm_to_vmem [thread:$0]  %s52_s4, 1024, %s54_s15, [#allocation7], %s1237_s9, %s1237_s9, %s1238_s10  }
   0xb   :  { %1230 = dma.done.wait [#allocation4], 1024  }
   0xc   :  { %1231 = vsyncadd [#allocation4], 4294966272 }
   0xd   :  { %1232 = dma.done.wait [#allocation7], 2048  }
   0xe   :  { %1233 = vsyncadd [#allocation7], 4294965248  ;;  %v1027_v0 = vld [vmem:[#allocation8 + $0x38] sm:$0xff]  ;;  %v1026_v1 = vld [vmem:[#allocation8 + $0x30] sm:$0xff]  ;;  %v1241_v49 = vmov 0   ;;  %s838_s8 = sshll.u32 %s1477_s7, 4  ;;  %s839_s8 = int_to_ptr.hbm [resolvable:$true] %s838_s8 }
   0xf   :  { %222 = vmatpush.bf16.msra.mxu0 %v1027_v0  ;;  %1099 = vmatpush.bf16.msra.mxu3 %v1027_v0  ;;  %v1025_v2 = vld [vmem:[#allocation8 + $0x28] sm:$0xff]  ;;  %v1024_v3 = vld [vmem:[#allocation8 + $0x20] sm:$0xff]  ;;  %v1023_v4 = vld [vmem:[#allocation8 + $0x18] sm:$0xff] }
  0x10   :  { %v1022_v5 = vld [vmem:[#allocation8 + $0x10] sm:$0xff]  ;;  %v1021_v6 = vld [vmem:[#allocation8 + $0x8] sm:$0xff]  ;;  %v1020_v7 = vld [vmem:[#allocation8] sm:$0xff]  ;;  %1130 = vset.pattern.permute.xlu0 %v1241_v49  ;;  %1131 = vset.pattern.permute.xlu1 %v1241_v49 }
  0x11   :  { %v1012_v8 = vld [vmem:[%s1471_s1] sm:$0xff]  ;;  %v1018_v9 = vld [vmem:[%s1471_s1 + $0x30] sm:$0xff]  ;;  %v1013_v10 = vld [vmem:[%s1471_s1 + $0x8] sm:$0xff]  ;;  %1132 = vset.pattern.permute.xlu2 %v1241_v49 }
  0x12   :  { %v1019_v11 = vld [vmem:[%s1471_s1 + $0x38] sm:$0xff]  ;;  %v1014_v12 = vld [vmem:[%s1471_s1 + $0x10] sm:$0xff]  ;;  %v1016_v14 = vld [vmem:[%s1471_s1 + $0x20] sm:$0xff] }
  0x13   :  { %223 = vmatpush.bf16.msra.mxu0 %v1026_v1  ;;  %1100 = vmatpush.bf16.msra.mxu3 %v1026_v1  ;;  %v1015_v13 = vld [vmem:[%s1471_s1 + $0x18] sm:$0xff]  ;;  %v1017_v15 = vld [vmem:[%s1471_s1 + $0x28] sm:$0xff]  ;;  %v1332_v31 = vld [vmem:[#allocation6 + $0x30] sm:$0xff] }
  0x14   :  { %v1329_v28 = vld [vmem:[#allocation6 + $0x38] sm:$0xff]  ;;  %v1335_v32 = vld [vmem:[#allocation6 + $0x28] sm:$0xff]  ;;  %v1338_v34 = vld [vmem:[#allocation6 + $0x20] sm:$0xff] }
  0x15   :  { %571 = vmatpush.bf16.msra.mxu2 %v1329_v28  ;;  %v1341_v35 = vld [vmem:[#allocation6 + $0x18] sm:$0xff]  ;;  %v1344_v37 = vld [vmem:[#allocation6 + $0x10] sm:$0xff]  ;;  %v1347_v38 = vld [vmem:[#allocation6 + $0x8] sm:$0xff] }
  0x16   :  { %v1350_v40 = vld [vmem:[#allocation6] sm:$0xff]  ;;  %v1037_v44 = vld [vmem:[#allocation3 + $0x8] sm:$0xff]  ;;  %v638_v47 = vld [vmem:[%s1473_s3 + $0x10] sm:$0xff] }
  0x17   :  { %224 = vmatpush.bf16.msra.mxu0 %v1025_v2  ;;  %1101 = vmatpush.bf16.msra.mxu3 %v1025_v2  ;;  %v1036_v41 = vld [vmem:[#allocation3] sm:$0xff]  ;;  %v637_v52 = vld [vmem:[%s1473_s3 + $0x8] sm:$0xff]  ;;  %v1038_v53 = vld [vmem:[#allocation3 + $0x10] sm:$0xff] }
  0x18   :  { %v636_v46 = vld [vmem:[%s1473_s3] sm:$0xff]  ;;  %664 = vperm.xlu1 %1131, %v638_v47   ;;  %v639_v54 = vld [vmem:[%s1473_s3 + $0x18] sm:$0xff]  ;;  %v642_v57 = vld [vmem:[%s1473_s3 + $0x30] sm:$0xff] }
  0x19   :  { %572 = vmatpush.bf16.msra.mxu2 %v1332_v31  ;;  %654 = vperm.xlu0 %1130, %v636_v46   ;;  %v643_v56 = vld [vmem:[%s1473_s3 + $0x38] sm:$0xff]  ;;  %v1028_v58 = vld [vmem:[%s1470_s0] sm:$0xff]  ;;  %v1034_v59 = vld [vmem:[%s1470_s0 + $0x30] sm:$0xff] }
  0x1a   :  { %v1039_v60 = vld [vmem:[#allocation3 + $0x18] sm:$0xff]  ;;  %v646_v61 = vld [vmem:[%s1473_s3 + $0x50] sm:$0xff]  ;;  %v645_v62 = vld [vmem:[%s1473_s3 + $0x48] sm:$0xff] }
  0x1b   :  { %225 = vmatpush.bf16.msra.mxu0 %v1024_v3  ;;  %1102 = vmatpush.bf16.msra.mxu3 %v1024_v3  ;;  %v649_v63 = vld [vmem:[%s1473_s3 + $0x68] sm:$0xff]  ;;  %v648_v0 = vld [vmem:[%s1473_s3 + $0x60] sm:$0xff]  ;;  %v1035_v2 = vld [vmem:[%s1470_s0 + $0x38] sm:$0xff] }
  0x1c   :  { %v1029_v1 = vld [vmem:[%s1470_s0 + $0x8] sm:$0xff]  ;;  %v1040_v3 = vld [vmem:[#allocation3 + $0x20] sm:$0xff] }
  0x1d   :  { %573 = vmatpush.bf16.msra.mxu2 %v1335_v32 }
  0x1f   :  { %226 = vmatpush.bf16.msra.mxu0 %v1023_v4  ;;  %1103 = vmatpush.bf16.msra.mxu3 %v1023_v4  ;;  %v640_v4 = vld [vmem:[%s1473_s3 + $0x20] sm:$0xff] }
  0x20   :  { %669 = vperm.xlu1 %1131, %v639_v54   ;;  %674 = vperm.xlu2 %1132, %v640_v4  }
  0x21   :  { %574 = vmatpush.bf16.msra.mxu2 %v1338_v34  ;;  %659 = vperm.xlu0 %1130, %v637_v52  }
  0x23   :  { %227 = vmatpush.bf16.msra.mxu0 %v1022_v5  ;;  %1104 = vmatpush.bf16.msra.mxu3 %v1022_v5  ;;  %v651_v5 = vld [vmem:[%s1473_s3 + $0x78] sm:$0xff] }
  0x25   :  { %575 = vmatpush.bf16.msra.mxu2 %v1341_v35 }
  0x27   :  { %228 = vmatpush.bf16.msra.mxu0 %v1021_v6  ;;  %1105 = vmatpush.bf16.msra.mxu3 %v1021_v6  ;;  %v641_v6 = vld [vmem:[%s1473_s3 + $0x28] sm:$0xff] }
  0x28   :  { %689 = vperm.xlu1 %1131, %v643_v56   ;;  %679 = vperm.xlu2 %1132, %v641_v6  }
  0x29   :  { %576 = vmatpush.bf16.msra.mxu2 %v1344_v37  ;;  %684 = vperm.xlu0 %1130, %v642_v57  }
  0x2b   :  { %229 = vmatpush.bf16.msra.mxu0 %v1020_v7  ;;  %1106 = vmatpush.bf16.msra.mxu3 %v1020_v7  ;;  %v1030_v7 = vld [vmem:[%s1470_s0 + $0x10] sm:$0xff] }
  0x2d   :  { %577 = vmatpush.bf16.msra.mxu2 %v1347_v38 }
  0x2e   :  { %230 = vmatmul.bf16.vlgmr.msra.gmra.mxu0 %v1012_v8  ;;  %260 = vmatmul.bf16.vlgmr.msra.gmra.mxu3 %v1018_v9  ;;  %v1042_v8 = vld [vmem:[#allocation3 + $0x30] sm:$0xff]  ;;  %v1041_v9 = vld [vmem:[#allocation3 + $0x28] sm:$0xff] }
  0x30   :  { %704 = vperm.xlu1 %1131, %v646_v61  }
  0x31   :  { %578 = vmatpush.bf16.msra.mxu2 %v1350_v40  ;;  %699 = vperm.xlu0 %1130, %v645_v62  }
  0x34   :  { %579 = vmatmul.bf16.vlgmr.msra.gmra.mxu2 %v1036_v41 }
  0x38   :  { %719 = vperm.xlu1 %1131, %v649_v63  }
  0x39   :  { %714 = vperm.xlu0 %1130, %v648_v0  }
  0x3e   :  { %235 = vmatmul.bf16.gmra.mxu0 %v1013_v10  ;;  %265 = vmatmul.bf16.gmra.mxu3 %v1019_v11  ;;  %v644_v10 = vld [vmem:[%s1473_s3 + $0x40] sm:$0xff]  ;;  %v647_v11 = vld [vmem:[%s1473_s3 + $0x58] sm:$0xff] }
  0x3f   :  { %694 = vperm.xlu2 %1132, %v644_v10  }
  0x41   :  { %729 = vperm.xlu0 %1130, %v651_v5  }
  0x44   :  { %584 = vmatmul.bf16.gmra.mxu2 %v1037_v44 }
  0x47   :  { %709 = vperm.xlu2 %1132, %v647_v11  }
  0x4e   :  { %240 = vmatmul.bf16.gmra.mxu0 %v1014_v12  ;;  %v1031_v12 = vld [vmem:[%s1470_s0 + $0x18] sm:$0xff] }
  0x54   :  { %589 = vmatmul.bf16.gmra.mxu2 %v1038_v53 }
  0x5e   :  { %245 = vmatmul.bf16.gmra.mxu0 %v1015_v13  ;;  %v1043_v13 = vld [vmem:[#allocation3 + $0x38] sm:$0xff] }
  0x64   :  { %594 = vmatmul.bf16.gmra.mxu2 %v1039_v60 }
  0x6e   :  { %250 = vmatmul.bf16.gmra.mxu0 %v1016_v14  ;;  %v650_v14 = vld [vmem:[%s1473_s3 + $0x70] sm:$0xff] }
  0x6f   :  { %724 = vperm.xlu2 %1132, %v650_v14  }
  0x74   :  { %599 = vmatmul.bf16.gmra.mxu2 %v1040_v3 }
  0x7e   :  { %255 = vmatmul.bf16.gmra.mxu0 %v1017_v15  ;;  %v1032_v15 = vld [vmem:[%s1470_s0 + $0x20] sm:$0xff] }
  0x84   :  { %604 = vmatmul.bf16.gmra.mxu2 %v1041_v9 }
  0xab   :  { %v231_v16 = vpop.f32.mrf.mxu0 }
  0xb1   :  { %v261_v17 = vpop.f32.mrf.mxu3 }
  0xb3   :  { %v233_v18 = vpop.f32.mrf.mxu0 }
  0xb4   :  { %v1325_v19 = vpack.c.bf16 %v233_v18, %v231_v16  ;;  %v1033_v16 = vld [vmem:[%s1470_s0 + $0x28] sm:$0xff]  ;;  %s1242_s0 = smov [#allocation9]  }
  0xb9   :  { %v263_v20 = vpop.f32.mrf.mxu3 }
  0xba   :  { %v277_v29 = vpack.c.bf16 %v263_v20, %v261_v17  ;;  %v580_v17 = vpop.f32.mrf.mxu2 }
  0xbb   :  { %v236_v21 = vpop.f32.mrf.mxu0 }
  0xc1   :  { %v266_v22 = vpop.f32.mrf.mxu3 }
  0xc2   :  { %v582_v18 = vpop.f32.mrf.mxu2 }
  0xc3   :  { %v238_v23 = vpop.f32.mrf.mxu0 }
  0xc4   :  { %v1327_v24 = vpack.c.bf16 %v238_v23, %v236_v21 }
  0xc9   :  { %v268_v25 = vpop.f32.mrf.mxu3 }
  0xca   :  { %v278_v26 = vpack.c.bf16 %v268_v25, %v266_v22  ;;  %v585_v21 = vpop.f32.mrf.mxu2  ;;  %v665_v22 = vpop.permute.xlu1 %664 }
  0xcb   :  { %v241_v27 = vpop.f32.mrf.mxu0 }
  0xcc   :  { %359 = vmatpush.bf16.msra.mxu1 %v278_v26  ;;  %1107 = vmatpush.bf16.msrb.mxu3 %v278_v26 }
  0xd0   :  { %360 = vmatpush.bf16.msra.mxu1 %v277_v29  ;;  %1108 = vmatpush.bf16.msrb.mxu3 %v277_v29 }
  0xd3   :  { %v243_v30 = vpop.f32.mrf.mxu0 }
  0xd4   :  { %v273_v55 = vpack.c.bf16 %v243_v30, %v241_v27  ;;  %v1440_v27 = vld [vmem:[%s1476_s6] ss:$0 sm:$0xff]  ;;  %v587_v30 = vpop.f32.mrf.mxu2  ;;  %s836_s6 = sshll.u32 %s1242_s0, 4  ;;  %s837_s6 = int_to_ptr.vmem [resolvable:$true] %s836_s6 }
  0xdb   :  { %v246_v33 = vpop.f32.mrf.mxu0 }
  0xe3   :  { %v248_v36 = vpop.f32.mrf.mxu0 }
  0xe4   :  { %v274_v51 = vpack.c.bf16 %v248_v36, %v246_v33  ;;  %v670_v33 = vpop.permute.xlu1 %669  ;;  %v675_v36 = vpop.permute.xlu2 %674 }
  0xeb   :  { %v251_v39 = vpop.f32.mrf.mxu0 }
  0xec   :  { %v690_v44 = vpop.permute.xlu1 %689 }
  0xf3   :  { %v253_v42 = vpop.f32.mrf.mxu0 }
  0xf4   :  { %v275_v50 = vpack.c.bf16 %v253_v42, %v251_v39 }
  0xfb   :  { %v256_v43 = vpop.f32.mrf.mxu0 }
 0x103   :  { %v258_v45 = vpop.f32.mrf.mxu0 }
 0x104   :  { %v276_v48 = vpack.c.bf16 %v258_v45, %v256_v43  ;;  %v590_v43 = vpop.f32.mrf.mxu2 }
 0x106   :  { %361 = vmatpush.bf16.msra.mxu1 %v276_v48  ;;  %1109 = vmatpush.bf16.msrb.mxu3 %v276_v48  ;;  %v680_v48 = vpop.permute.xlu2 %679 }
 0x10a   :  { %362 = vmatpush.bf16.msra.mxu1 %v275_v50  ;;  %1110 = vmatpush.bf16.msrb.mxu3 %v275_v50 }
 0x10e   :  { %363 = vmatpush.bf16.msra.mxu1 %v274_v51  ;;  %1111 = vmatpush.bf16.msrb.mxu3 %v274_v51  ;;  %v695_v61 = vpop.permute.xlu2 %694 }
 0x112   :  { %364 = vmatpush.bf16.msra.mxu1 %v273_v55  ;;  %1112 = vmatpush.bf16.msrb.mxu3 %v273_v55  ;;  %v592_v55 = vpop.f32.mrf.mxu2 }
 0x116   :  { %365 = vmatpush.bf16.msra.mxu1 %v1327_v24  ;;  %1113 = vmatpush.bf16.msrb.mxu3 %v1327_v24  ;;  %v710_v10 = vpop.permute.xlu2 %709 }
 0x11a   :  { %366 = vmatpush.bf16.msra.mxu1 %v1325_v19  ;;  %1114 = vmatpush.bf16.msrb.mxu3 %v1325_v19  ;;  %v655_v19 = vpop.permute.xlu0 %654  ;;  %v595_v3 = vpop.f32.mrf.mxu2 }
 0x11d   :  { %367 = vmatmul.bf16.vlgmr.msra.gmra.mxu1 %v1028_v58  ;;  %397 = vmatmul.bf16.vlgmr.msrb.gmra.mxu3 %v1034_v59  ;;  %v1448_v58 = vpop.permute.xlu1 %704 }
 0x11e   :  { %1115 = vmatpush.bf16.msra.mxu3 %v1329_v28 }
 0x122   :  { %1116 = vmatpush.bf16.msra.mxu3 %v1332_v31  ;;  %v660_v25 = vpop.permute.xlu0 %659 }
 0x125   :  { %v720_v6 = vpop.permute.xlu1 %719 }
 0x126   :  { %1117 = vmatpush.bf16.msra.mxu3 %v1335_v32 }
 0x12a   :  { %1118 = vmatpush.bf16.msra.mxu3 %v1338_v34  ;;  %v685_v41 = vpop.permute.xlu0 %684 }
 0x12d   :  { %372 = vmatmul.bf16.gmra.mxu1 %v1029_v1  ;;  %402 = vmatmul.bf16.gmra.mxu3 %v1035_v2 }
 0x12e   :  { %1119 = vmatpush.bf16.msra.mxu3 %v1341_v35 }
 0x132   :  { %1120 = vmatpush.bf16.msra.mxu3 %v1344_v37  ;;  %v1445_v52 = vpop.permute.xlu0 %699 }
 0x136   :  { %1121 = vmatpush.bf16.msra.mxu3 %v1347_v38 }
 0x13a   :  { %1122 = vmatpush.bf16.msra.mxu3 %v1350_v40  ;;  %v715_v63 = vpop.permute.xlu0 %714 }
 0x13d   :  { %377 = vmatmul.bf16.gmra.mxu1 %v1030_v7  ;;  %609 = vmatmul.bf16.vlgmr.msra.gmra.mxu3 %v1042_v8 }
 0x14d   :  { %382 = vmatmul.bf16.gmra.mxu1 %v1031_v12  ;;  %614 = vmatmul.bf16.gmra.mxu3 %v1043_v13 }
 0x15d   :  { %387 = vmatmul.bf16.gmra.mxu1 %v1032_v15 }
 0x16d   :  { %392 = vmatmul.bf16.gmra.mxu1 %v1033_v16 }
 0x19a   :  { %v368_v20 = vpop.f32.mrf.mxu1 }
 0x19b   :  { %v732_v23 = vmul.f32 %v655_v19, %v368_v20 }
 0x19d   :  { %v748_v26 = vadd.f32 %v732_v23, %v580_v17 }
 0x19f   :  { %v768_v31 = vadd.f32 %v1440_v27, %v748_v26  ;;  %v725_v26 = vpop.permute.xlu2 %724 }
 0x1a0   :  { %v398_v24 = vpop.f32.mrf.mxu3 }
 0x1a1   :  { %v784_v37 = vmax.f32 %v768_v31, 0.0  ;;  %v744_v4 = vmul.f32 %v715_v63, %v398_v24 }
 0x1a2   :  { %v370_v28 = vpop.f32.mrf.mxu1 }
 0x1a3   :  { %v733_v29 = vmul.f32 %v660_v25, %v370_v28 }
 0x1a5   :  { %v749_v32 = vadd.f32 %v733_v29, %v582_v18 }
 0x1a7   :  { %v769_v34 = vadd.f32 %v1440_v27, %v749_v32 }
 0x1a8   :  { %v400_v35 = vpop.f32.mrf.mxu3 }
 0x1a9   :  { %v785_v38 = vmax.f32 %v769_v34, 0.0  ;;  %v745_v11 = vmul.f32 %v720_v6, %v400_v35 }
 0x1aa   :  { %v373_v39 = vpop.f32.mrf.mxu1 }
 0x1ab   :  { %v1055_v40 = vpack.c.bf16 %v785_v38, %v784_v37  ;;  %v734_v42 = vmul.f32 %v665_v22, %v373_v39 }
 0x1ad   :  { %1056 = vst [vmem:[#allocation9] sm:$0xff] %v1055_v40   ;;  %v750_v46 = vadd.f32 %v734_v42, %v585_v21  ;;  %v597_v21 = vpop.f32.mrf.mxu2 }
 0x1af   :  { %v770_v50 = vadd.f32 %v1440_v27, %v750_v46 }
 0x1b0   :  { %v403_v45 = vpop.f32.mrf.mxu3 }
 0x1b1   :  { %v786_v56 = vmax.f32 %v770_v50, 0.0  ;;  %v746_v31 = vmul.f32 %v725_v26, %v403_v45 }
 0x1b2   :  { %v375_v47 = vpop.f32.mrf.mxu1 }
 0x1b3   :  { %v735_v49 = vmul.f32 %v670_v33, %v375_v47  ;;  %v730_v33 = vpop.permute.xlu0 %729 }
 0x1b5   :  { %v751_v51 = vadd.f32 %v735_v49, %v587_v30  ;;  %v600_v37 = vpop.f32.mrf.mxu2 }
 0x1b7   :  { %v771_v53 = vadd.f32 %v1440_v27, %v751_v51 }
 0x1b8   :  { %v405_v54 = vpop.f32.mrf.mxu3 }
 0x1b9   :  { %v787_v57 = vmax.f32 %v771_v53, 0.0  ;;  %v747_v38 = vmul.f32 %v730_v33, %v405_v54 }
 0x1ba   :  { %v378_v59 = vpop.f32.mrf.mxu1 }
 0x1bb   :  { %v1060_v60 = vpack.c.bf16 %v787_v57, %v786_v56  ;;  %v736_v62 = vmul.f32 %v675_v36, %v378_v59 }
 0x1bd   :  { %1092 = vst [vmem:[#allocation9 + $0x8] sm:$0xff] %v1060_v60   ;;  %v752_v1 = vadd.f32 %v736_v62, %v590_v43  ;;  %v602_v53 = vpop.f32.mrf.mxu2 }
 0x1bf   :  { %v772_v7 = vadd.f32 %v1440_v27, %v752_v1 }
 0x1c0   :  { %v610_v0 = vpop.f32.mrf.mxu3 }
 0x1c1   :  { %v760_v8 = vadd.f32 %v744_v4, %v610_v0  ;;  %v788_v14 = vmax.f32 %v772_v7, 0.0 }
 0x1c2   :  { %v380_v2 = vpop.f32.mrf.mxu1 }
 0x1c3   :  { %v737_v5 = vmul.f32 %v680_v48, %v380_v2  ;;  %v780_v15 = vadd.f32 %v1440_v27, %v760_v8 }
 0x1c5   :  { %v753_v9 = vadd.f32 %v737_v5, %v592_v55  ;;  %v796_v22 = vmax.f32 %v780_v15, 0.0  ;;  %v605_v0 = vpop.f32.mrf.mxu2 }
 0x1c7   :  { %v773_v12 = vadd.f32 %v1440_v27, %v753_v9 }
 0x1c8   :  { %v612_v13 = vpop.f32.mrf.mxu3 }
 0x1c9   :  { %v789_v16 = vmax.f32 %v773_v12, 0.0  ;;  %v761_v17 = vadd.f32 %v745_v11, %v612_v13 }
 0x1ca   :  { %v383_v18 = vpop.f32.mrf.mxu1 }
 0x1cb   :  { %v1065_v19 = vpack.c.bf16 %v789_v16, %v788_v14  ;;  %v781_v20 = vadd.f32 %v1440_v27, %v761_v17  ;;  %v738_v24 = vmul.f32 %v685_v41, %v383_v18 }
 0x1cd   :  { %1093 = vst [vmem:[#allocation9 + $0x10] sm:$0xff] %v1065_v19   ;;  %v797_v23 = vmax.f32 %v781_v20, 0.0  ;;  %v754_v29 = vadd.f32 %v738_v24, %v595_v3  ;;  %v607_v6 = vpop.f32.mrf.mxu2 }
 0x1cf   :  { %v1085_v25 = vpack.c.bf16 %v797_v23, %v796_v22  ;;  %v774_v34 = vadd.f32 %v1440_v27, %v754_v29 }
 0x1d0   :  { %v615_v28 = vpop.f32.mrf.mxu3 }
 0x1d1   :  { %1097 = vst [vmem:[#allocation9 + $0x30] sm:$0xff] %v1085_v25   ;;  %v762_v35 = vadd.f32 %v746_v31, %v615_v28  ;;  %v790_v42 = vmax.f32 %v774_v34, 0.0 }
 0x1d2   :  { %v385_v30 = vpop.f32.mrf.mxu1 }
 0x1d3   :  { %v739_v32 = vmul.f32 %v690_v44, %v385_v30  ;;  %v782_v41 = vadd.f32 %v1440_v27, %v762_v35 }
 0x1d5   :  { %v755_v36 = vadd.f32 %v739_v32, %v597_v21  ;;  %v798_v44 = vmax.f32 %v782_v41, 0.0 }
 0x1d7   :  { %v775_v39 = vadd.f32 %v1440_v27, %v755_v36 }
 0x1d8   :  { %v617_v40 = vpop.f32.mrf.mxu3 }
 0x1d9   :  { %v791_v43 = vmax.f32 %v775_v39, 0.0  ;;  %v763_v46 = vadd.f32 %v747_v38, %v617_v40 }
 0x1da   :  { %v388_v47 = vpop.f32.mrf.mxu1 }
 0x1db   :  { %v1070_v48 = vpack.c.bf16 %v791_v43, %v790_v42  ;;  %v783_v45 = vadd.f32 %v1440_v27, %v763_v46  ;;  %v740_v50 = vmul.f32 %v695_v61, %v388_v47 }
 0x1dd   :  { %1094 = vst [vmem:[#allocation9 + $0x18] sm:$0xff] %v1070_v48   ;;  %v799_v49 = vmax.f32 %v783_v45, 0.0  ;;  %v756_v54 = vadd.f32 %v740_v50, %v600_v37 }
 0x1df   :  { %v1090_v51 = vpack.c.bf16 %v799_v49, %v798_v44  ;;  %v776_v57 = vadd.f32 %v1440_v27, %v756_v54 }
 0x1e1   :  { %1098 = vst [vmem:[#allocation9 + $0x38] sm:$0xff] %v1090_v51   ;;  %v792_v62 = vmax.f32 %v776_v57, 0.0 }
 0x1e2   :  { %v390_v55 = vpop.f32.mrf.mxu1 }
 0x1e3   :  { %v741_v56 = vmul.f32 %v1445_v52, %v390_v55 }
 0x1e5   :  { %v757_v59 = vadd.f32 %v741_v56, %v602_v53 }
 0x1e7   :  { %v777_v60 = vadd.f32 %v1440_v27, %v757_v59 }
 0x1e9   :  { %v793_v63 = vmax.f32 %v777_v60, 0.0 }
 0x1ea   :  { %v393_v1 = vpop.f32.mrf.mxu1 }
 0x1eb   :  { %v1075_v2 = vpack.c.bf16 %v793_v63, %v792_v62  ;;  %v742_v61 = vmul.f32 %v1448_v58, %v393_v1 }
 0x1ed   :  { %1095 = vst [vmem:[#allocation9 + $0x20] sm:$0xff] %v1075_v2   ;;  %v758_v3 = vadd.f32 %v742_v61, %v605_v0 }
 0x1ef   :  { %v778_v7 = vadd.f32 %v1440_v27, %v758_v3 }
 0x1f1   :  { %v794_v9 = vmax.f32 %v778_v7, 0.0 }
 0x1f2   :  { %v395_v4 = vpop.f32.mrf.mxu1 }
 0x1f3   :  { %v743_v5 = vmul.f32 %v710_v10, %v395_v4 }
 0x1f5   :  { %v759_v52 = vadd.f32 %v743_v5, %v607_v6 }
 0x1f7   :  { %v779_v8 = vadd.f32 %v1440_v27, %v759_v52 }
 0x1f9   :  { %v795_v11 = vmax.f32 %v779_v8, 0.0 }
 0x1fb   :  { %v1080_v12 = vpack.c.bf16 %v795_v11, %v794_v9 }
 0x1fd   :  { %1096 = vst [vmem:[#allocation9 + $0x28] sm:$0xff] %v1080_v12  }
 0x1fe   :  { %844 = dma.vmem_to_hbm [thread:$0]  %s837_s6, 1024, %s839_s8, [#allocation5], %s1237_s9, %s1237_s9, %s1238_s10  }
 0x1ff   :  { %1234 = dma.done.wait [#allocation5], 1024  }
 0x200   :  { %1235 = vsyncadd [#allocation5], 4294966272 }
 0x201   :  { %849 = vsyncpa [#allocation4], 1 }
 0x202   :  { %850 = vsyncpa [#allocation7], 1 }
 0x203   :  { %851 = vsyncpa [#allocation5], 1 }

</bundles_post_ra>
